<compile_context>
chip_gen: v7x
topology: tpu7x:2x2x1
jax: 0.10.0
libtpu: 0.0.40
codegen_flags: <defaults>
</compile_context>

<pallas_src>
import jax
import jax.numpy as jnp
from jax.experimental import pallas as pl
from jax.experimental.pallas import tpu as pltpu


def _tv_loss_kernel(x_ref, o_ref, acc_ref, prev_row_ref):
    # x_ref:        (P, TH, W) input tile (P planes x TH rows), any float dtype
    # o_ref:        (1, 1, 2) f32 output block, resident per core-split
    # acc_ref:      (1, 2) f32 VMEM running sums: [:, 0] = h_tv, [:, 1] = w_tv
    # prev_row_ref: (P, 1, W) f32 VMEM carry of the previous H-tile's last row
    g = pl.program_id(1)          # plane-group index (arbitrary)
    k = pl.program_id(2)          # H-tile index (innermost, arbitrary)
    ng = pl.num_programs(1)
    nk = pl.num_programs(2)

    lane = jax.lax.broadcasted_iota(jnp.int32, (1, 2), 1)   # [[0, 1]]

    @pl.when((g == 0) & (k == 0))
    def _init():
        acc_ref[...] = jnp.zeros_like(acc_ref)

    x = x_ref[...].astype(jnp.float32)        # (P, TH, W), upcast if bf16

    # In-tile shifted differences (pure VALU work per step).
    dh = x[:, 1:, :] - x[:, :-1, :]           # (P, TH-1, W)
    dw = x[:, :, 1:] - x[:, :, :-1]           # (P, TH,   W-1)
    h_part = jnp.sum(dh * dh)                 # scalar (XLU reduce, free slot)
    w_part = jnp.sum(dw * dw)                 # scalar
    acc_ref[...] = acc_ref[...] + jnp.where(lane == 0, h_part, w_part)

    # Vertical diff across the H-tile boundary (uses the carried last row of
    # the previous H-tile of the same plane group).
    @pl.when(k > 0)
    def _boundary():
        db = x[:, 0:1, :] - prev_row_ref[...]           # (P, 1, W)
        acc_ref[...] = acc_ref[...] + jnp.where(lane == 0, jnp.sum(db * db), 0.0)

    # Carry this tile's last row for the next H-tile.
    prev_row_ref[...] = x[:, -1:, :]

    @pl.when((g == ng - 1) & (k == nk - 1))
    def _finalize():
        o_ref[0] = acc_ref[...]               # (1, 2) partial [h_tv, w_tv]


def _choose_tiling(nc, h, w, itemsize, ns, target_bytes):
    """Pick (planes_per_block P, rows_per_block TH) for ~target_bytes tiles."""
    plane_bytes = h * w * itemsize
    if plane_bytes <= target_bytes:
        # Whole planes per step; pack several planes into one block.
        th = h
        p = max(1, target_bytes // plane_bytes)
        p = int(max(1, min(p, pl.cdiv(nc, ns))))   # don't over-pad tiny inputs
        return p, th
    # Plane is larger than the target tile: one plane per step, tile H.
    # TH must divide H exactly and (being < H) be a multiple of 8 for layout.
    max_rows = target_bytes // (w * itemsize)
    best = None
    d = 8
    while d <= min(h, max_rows):
        if h % d == 0:
            best = d
        d += 8
    if best is None:
        # TODO(synk): H has no multiple-of-8 divisor that fits the budget
        # (awkward H with huge W); fall back to whole-plane blocks and rely on
        # the raised vmem_limit_bytes.
        best = h
    return 1, best


def tv_loss(x, *, target_tile_bytes=2 * 1024 * 1024, num_core_splits=2):
    """x: (N, C, H, W), f32 or bf16, NCHW. Returns scalar f32 TV loss."""
    n, c, h, w = x.shape
    assert h >= 2 and w >= 2, "TVLoss requires H >= 2 and W >= 2"

    nc = n * c
    itemsize = jnp.dtype(x.dtype).itemsize
    ns = num_core_splits                           # parallel core-split axis

    p, th = _choose_tiling(nc, h, w, itemsize, ns, target_tile_bytes)
    kh = h // th                                   # th divides h by construction

    groups_total = pl.cdiv(nc, p)
    g_per_split = pl.cdiv(groups_total, ns)
    planes_pad = ns * g_per_split * p

    # Flatten N*C planes; pad with zero planes (they contribute exactly 0 to
    # both h_tv and w_tv, so the result is unchanged).
    xf = x.reshape(nc, h, w)
    if planes_pad > nc:
        pad = jnp.zeros((planes_pad - nc, h, w), dtype=x.dtype)
        xf = jnp.concatenate([xf, pad], axis=0)

    grid = (ns, g_per_split, kh)                   # (parallel, arbitrary, arbitrary)

    partials = pl.pallas_call(
        _tv_loss_kernel,
        out_shape=jax.ShapeDtypeStruct((ns, 1, 2), jnp.float32),
        grid=grid,
        in_specs=[
            pl.BlockSpec((p, th, w),
                         lambda s, g, k: (s * g_per_split + g, k, 0)),
        ],
        # One resident (1,1,2) output block per core-split; written once in the
        # finalize epilogue, flushed when the split index changes / grid ends.
        out_specs=pl.BlockSpec((1, 1, 2), lambda s, g, k: (s, 0, 0)),
        scratch_shapes=[
            pltpu.VMEM((1, 2), jnp.float32),       # [h_tv, w_tv] running sums
            pltpu.VMEM((p, 1, w), jnp.float32),    # carried last row per plane
        ],
        compiler_params=pltpu.CompilerParams(
            dimension_semantics=("parallel", "arbitrary", "arbitrary"),
            vmem_limit_bytes=48 * 1024 * 1024,     # v5e default is only 16 MiB
        ),
    )(xf)

    # Combine per-core partial sums and apply the TVLoss normalization here
    # (kept out of the kernel so the parallel split stays trivially correct).
    h_tv = jnp.sum(partials[:, 0, 0])
    w_tv = jnp.sum(partials[:, 0, 1])
    count_h = float(c * (h - 1) * w)
    count_w = float(c * h * (w - 1))
    return 2.0 * (h_tv / count_h + w_tv / count_w) / float(n)


def _reference(x):
    # Plain-JAX reference mirroring the PyTorch TVLoss.forward.
    xf = x.astype(jnp.float32)
    n, c, h, w = xf.shape
    count_h = c * (h - 1) * w
    count_w = c * h * (w - 1)
    h_tv = jnp.sum((xf[:, :, 1:, :] - xf[:, :, :-1, :]) ** 2)
    w_tv = jnp.sum((xf[:, :, :, 1:] - xf[:, :, :, :-1]) ** 2)
    return 2.0 * (h_tv / count_h + w_tv / count_w) / n


if __name__ == "__main__":
    key = jax.random.PRNGKey(0)
    # Small shape consistent with the module: batch=2, channels=4, 16x16.
    x = jax.random.normal(key, (2, 4, 16, 16), dtype=jnp.float32)

    loss = tv_loss(x)
    loss = jax.block_until_ready(loss)

    ref = _reference(x)
    assert jnp.allclose(loss, ref, rtol=1e-5, atol=1e-5), (loss, ref)

    print("KERNEL_OK")
</pallas_src>

<mosaic_0001>
module attributes {stable_mosaic.version = 11 : i64} {
  func.func @_tv_loss_kernel(%arg0: i32, %arg1: i32, %arg2: i32, %arg3: memref<4x16x16xf32, #tpu.memory_space<vmem>>, %arg4: memref<1x1x2xf32, #tpu.memory_space<vmem>>, %arg5: memref<1x2xf32, #tpu.memory_space<vmem>>, %arg6: memref<4x1x16xf32, #tpu.memory_space<vmem>>) attributes {dimension_semantics = [#tpu.dimension_semantics<parallel>, #tpu.dimension_semantics<arbitrary>, #tpu.dimension_semantics<arbitrary>], iteration_bounds = array<i64: 2, 1, 1>, scalar_prefetch = 0 : i64, scratch_operands = 2 : i64, tpu.core_type = #tpu.core_type<tc>, window_params = [{transform_indices = @transform_0, window_bounds = array<i64: 4, 16, 16>}, {transform_indices = @transform_1, window_bounds = array<i64: 1, 1, 2>}]} {
    %0 = tpu.iota {dimensions = array<i32: 1>} : vector<1x2xi32>
    %c0_i32 = arith.constant 0 : i32
    %1 = arith.cmpi eq, %arg1, %c0_i32 : i32
    %c0_i32_0 = arith.constant 0 : i32
    %2 = arith.cmpi eq, %arg2, %c0_i32_0 : i32
    %3 = arith.andi %1, %2 : i1
    %4 = arith.extui %3 : i1 to i32
    %c0_i32_1 = arith.constant 0 : i32
    %5 = arith.cmpi ne, %4, %c0_i32_1 : i32
    scf.if %5 {
      %cst_18 = arith.constant 0.000000e+00 : f32
      %41 = vector.broadcast %cst_18 : f32 to vector<1x2xf32>
      %c0_19 = arith.constant 0 : index
      %c0_20 = arith.constant 0 : index
      %42 = vector.load %arg5[%c0_19, %c0_20] : memref<1x2xf32, #tpu.memory_space<vmem>>, vector<1x2xf32>
      tpu.vector_store %arg5[%c0_19, %c0_20], %41 {strides = array<i32>} : memref<1x2xf32, #tpu.memory_space<vmem>>, vector<1x2xf32>,
    } else {
    }
    %c0 = arith.constant 0 : index
    %c0_2 = arith.constant 0 : index
    %c0_3 = arith.constant 0 : index
    %6 = vector.load %arg3[%c0, %c0_2, %c0_3] : memref<4x16x16xf32, #tpu.memory_space<vmem>>, vector<4x16x16xf32>
    %7 = vector.extract_strided_slice %6 {offsets = [0, 1, 0], sizes = [4, 15, 16], strides = [1, 1, 1]} : vector<4x16x16xf32> to vector<4x15x16xf32>
    %8 = vector.extract_strided_slice %6 {offsets = [0, 0, 0], sizes = [4, 15, 16], strides = [1, 1, 1]} : vector<4x16x16xf32> to vector<4x15x16xf32>
    %9 = arith.subf %7, %8 : vector<4x15x16xf32>
    %10 = vector.extract_strided_slice %6 {offsets = [0, 0, 1], sizes = [4, 16, 15], strides = [1, 1, 1]} : vector<4x16x16xf32> to vector<4x16x15xf32>
    %11 = vector.extract_strided_slice %6 {offsets = [0, 0, 0], sizes = [4, 16, 15], strides = [1, 1, 1]} : vector<4x16x16xf32> to vector<4x16x15xf32>
    %12 = arith.subf %10, %11 : vector<4x16x15xf32>
    %13 = arith.mulf %9, %9 : vector<4x15x16xf32>
    %14 = vector.shape_cast %13 : vector<4x15x16xf32> to vector<1x4x15x16xf32>
    %cst = arith.constant dense<0.000000e+00> : vector<1xf32>
    %15 = vector.multi_reduction <add>, %14, %cst [1, 2, 3] : vector<1x4x15x16xf32> to vector<1xf32>
    %16 = vector.shape_cast %15 : vector<1xf32> to vector<1x1x1x1xf32>
    %17 = vector.extract %16[0, 0, 0, 0] : f32 from vector<1x1x1x1xf32>
    %18 = arith.mulf %12, %12 : vector<4x16x15xf32>
    %19 = vector.shape_cast %18 : vector<4x16x15xf32> to vector<1x4x16x15xf32>
    %cst_4 = arith.constant dense<0.000000e+00> : vector<1xf32>
    %20 = vector.multi_reduction <add>, %19, %cst_4 [1, 2, 3] : vector<1x4x16x15xf32> to vector<1xf32>
    %21 = vector.shape_cast %20 : vector<1xf32> to vector<1x1x1x1xf32>
    %22 = vector.extract %21[0, 0, 0, 0] : f32 from vector<1x1x1x1xf32>
    %c0_5 = arith.constant 0 : index
    %c0_6 = arith.constant 0 : index
    %23 = vector.load %arg5[%c0_5, %c0_6] : memref<1x2xf32, #tpu.memory_space<vmem>>, vector<1x2xf32>
    %c0_i32_7 = arith.constant 0 : i32
    %24 = vector.broadcast %c0_i32_7 : i32 to vector<1x2xi32>
    %25 = arith.cmpi eq, %0, %24 : vector<1x2xi32>
    %26 = vector.broadcast %17 : f32 to vector<1x2xf32>
    %27 = vector.broadcast %22 : f32 to vector<1x2xf32>
    %28 = arith.select %25, %26, %27 : vector<1x2xi1>, vector<1x2xf32>
    %29 = arith.addf %23, %28 : vector<1x2xf32>
    %c0_8 = arith.constant 0 : index
    %c0_9 = arith.constant 0 : index
    %30 = vector.load %arg5[%c0_8, %c0_9] : memref<1x2xf32, #tpu.memory_space<vmem>>, vector<1x2xf32>
    tpu.vector_store %arg5[%c0_8, %c0_9], %29 {strides = array<i32>} : memref<1x2xf32, #tpu.memory_space<vmem>>, vector<1x2xf32>,
    %c0_i32_10 = arith.constant 0 : i32
    %31 = arith.cmpi sgt, %arg2, %c0_i32_10 : i32
    %32 = arith.extui %31 : i1 to i32
    %c0_i32_11 = arith.constant 0 : i32
    %33 = arith.cmpi ne, %32, %c0_i32_11 : i32
    scf.if %33 {
      %41 = vector.extract_strided_slice %6 {offsets = [0, 0, 0], sizes = [4, 1, 16], strides = [1, 1, 1]} : vector<4x16x16xf32> to vector<4x1x16xf32>
      %c0_18 = arith.constant 0 : index
      %c0_19 = arith.constant 0 : index
      %c0_20 = arith.constant 0 : index
      %42 = vector.load %arg6[%c0_18, %c0_19, %c0_20] : memref<4x1x16xf32, #tpu.memory_space<vmem>>, vector<4x1x16xf32>
      %43 = arith.subf %41, %42 : vector<4x1x16xf32>
      %c0_21 = arith.constant 0 : index
      %c0_22 = arith.constant 0 : index
      %44 = vector.load %arg5[%c0_21, %c0_22] : memref<1x2xf32, #tpu.memory_space<vmem>>, vector<1x2xf32>
      %c0_i32_23 = arith.constant 0 : i32
      %45 = vector.broadcast %c0_i32_23 : i32 to vector<1x2xi32>
      %46 = arith.cmpi eq, %0, %45 : vector<1x2xi32>
      %47 = arith.mulf %43, %43 : vector<4x1x16xf32>
      %48 = vector.shape_cast %47 : vector<4x1x16xf32> to vector<1x4x1x16xf32>
      %cst_24 = arith.constant dense<0.000000e+00> : vector<1xf32>
      %49 = vector.multi_reduction <add>, %48, %cst_24 [1, 2, 3] : vector<1x4x1x16xf32> to vector<1xf32>
      %50 = vector.shape_cast %49 : vector<1xf32> to vector<1x1x1x1xf32>
      %51 = vector.extract %50[0, 0, 0, 0] : f32 from vector<1x1x1x1xf32>
      %cst_25 = arith.constant 0.000000e+00 : f32
      %52 = vector.broadcast %51 : f32 to vector<1x2xf32>
      %53 = vector.broadcast %cst_25 : f32 to vector<1x2xf32>
      %54 = arith.select %46, %52, %53 : vector<1x2xi1>, vector<1x2xf32>
      %55 = arith.addf %44, %54 : vector<1x2xf32>
      %c0_26 = arith.constant 0 : index
      %c0_27 = arith.constant 0 : index
      %56 = vector.load %arg5[%c0_26, %c0_27] : memref<1x2xf32, #tpu.memory_space<vmem>>, vector<1x2xf32>
      tpu.vector_store %arg5[%c0_26, %c0_27], %55 {strides = array<i32>} : memref<1x2xf32, #tpu.memory_space<vmem>>, vector<1x2xf32>,
    } else {
    }
    %34 = vector.extract_strided_slice %6 {offsets = [0, 15, 0], sizes = [4, 1, 16], strides = [1, 1, 1]} : vector<4x16x16xf32> to vector<4x1x16xf32>
    %c0_12 = arith.constant 0 : index
    %c0_13 = arith.constant 0 : index
    %c0_14 = arith.constant 0 : index
    %35 = vector.load %arg6[%c0_12, %c0_13, %c0_14] : memref<4x1x16xf32, #tpu.memory_space<vmem>>, vector<4x1x16xf32>
    tpu.vector_store %arg6[%c0_12, %c0_13, %c0_14], %34 {strides = array<i32>} : memref<4x1x16xf32, #tpu.memory_space<vmem>>, vector<4x1x16xf32>,
    %c0_i32_15 = arith.constant 0 : i32
    %36 = arith.cmpi eq, %arg1, %c0_i32_15 : i32
    %c0_i32_16 = arith.constant 0 : i32
    %37 = arith.cmpi eq, %arg2, %c0_i32_16 : i32
    %38 = arith.andi %36, %37 : i1
    %39 = arith.extui %38 : i1 to i32
    %c0_i32_17 = arith.constant 0 : i32
    %40 = arith.cmpi ne, %39, %c0_i32_17 : i32
    scf.if %40 {
      %c0_18 = arith.constant 0 : index
      %c0_19 = arith.constant 0 : index
      %41 = vector.load %arg5[%c0_18, %c0_19] : memref<1x2xf32, #tpu.memory_space<vmem>>, vector<1x2xf32>
      %c0_20 = arith.constant 0 : index
      %c0_21 = arith.constant 0 : index
      %c0_22 = arith.constant 0 : index
      %42 = vector.load %arg4[%c0_20, %c0_21, %c0_22] : memref<1x1x2xf32, #tpu.memory_space<vmem>>, vector<1x1x2xf32>
      %43 = vector.shape_cast %42 : vector<1x1x2xf32> to vector<1x2xf32>
      %44 = vector.shape_cast %41 : vector<1x2xf32> to vector<1x1x2xf32>
      tpu.vector_store %arg4[%c0_20, %c0_21, %c0_22], %44 {strides = array<i32>} : memref<1x1x2xf32, #tpu.memory_space<vmem>>, vector<1x1x2xf32>,
    } else {
    }
    return
  }
  func.func @transform_0(%arg0: i32, %arg1: i32, %arg2: i32) -> (i32, i32, i32) {
    %c1_i32 = arith.constant 1 : i32
    %0 = arith.muli %arg0, %c1_i32 : i32
    %1 = arith.addi %0, %arg1 : i32
    %c0_i32 = arith.constant 0 : i32
    %c0_i32_0 = arith.constant 0 : i32
    return %1, %arg2, %c0_i32 : i32, i32, i32
  }
  func.func @transform_1(%arg0: i32, %arg1: i32, %arg2: i32) -> (i32, i32, i32) {
    %c0_i32 = arith.constant 0 : i32
    %c0_i32_0 = arith.constant 0 : i32
    %c0_i32_1 = arith.constant 0 : i32
    return %arg0, %c0_i32, %c0_i32_0 : i32, i32, i32
  }
}

</mosaic_0001>

<bundles_post_ra>
// kernel: tpu_custom_call.1
= control target key start
LH: loop header
LB: loop body
LE: loop exit
PB: predicated region body
PF: predicated region fallthrough
CT: control target
= control target key end

     0   :  { %6 = vsyncpa [#allocation5], 0  ;;  %s966_s0 = inlined_call_operand.hbm [shape: f32[8,16,16], index: 0, kind: input, shape index: {}]   ;;  %s967_s1 = inlined_call_operand.hbm [shape: f32[2,1,2], index: 1, kind: output, shape index: {}]  }
   0x1   :  { %8 = vsyncpa [#allocation5 + $0x1], 0 }
   0x2   :  { %9 = vsyncpa [#allocation6], 0 }
   0x3   :  { %11 = vsyncpa [#allocation6 + $0x1], 0  ;;  %s745_s6 = smov 0   ;;  %s747_s7 = smov 0  }
   0x4   :  { %s749_s8 = smov 0   ;;  %s751_s9 = smov 0  }
   0x5   :  { %s753_s10 = smov 0   ;;  %s755_s11 = smov 0  }
   0x6 LB: > { %s528_s12 = sadd.s32 4294967295, %s726_s11   ;;  %s529_s13 = sadd.s32 4294967294, %s726_s11   ;;  %s726_s11 = sphi %s755_s11, %s17_s11   ;;  %s722_s10 = sphi %s753_s10, %s982_s10   ;;  %s718_s9 = sphi %s751_s9, %s981_s9   ;;  %s714_s8 = sphi %s749_s8, %s980_s8   ;;  %s710_s7 = sphi %s747_s7, %s979_s7   ;;  %s706_s6 = sphi %s745_s6, %s978_s6  }
   0x7   : > { %s36_s14 = sadd.s32 1, %s722_s10  ;;  %s47_s15 = sadd.s32 1, %s714_s8 }
   0x8   : > { %p38_p0 = scmp.ge.s32.totalorder %s36_s14, 2  ;;  %p54_p1 = scmp.ne.s32.totalorder %s714_s8, %s710_s7 }
   0x9   : > { %p55_p2 = scmp.eq.s32.totalorder %s726_s11, 0  ;;  %p60_p3 = scmp.ne.s32.totalorder %s710_s7, %s706_s6 }
   0xa   : > { %s984_s14 = smov (%p38_p0, %s36_s14), 0  ;;  %p61_p5 = scmp.eq.s32.totalorder %s528_s12, 0 }
   0xb   : > { %p786_p4 = por %p55_p2, %p54_p1  ;;  %s42_s17 = ssub.s32 %s722_s10, %s984_s14 }
   0xc   : > { %p84_p6 = scmp.eq.s32.totalorder %s528_s12, 1  ;;  %p45_p7 = scmp.eq.s32.totalorder %s42_s17, 0 }
   0xd   : > { %p792_p8 = por %p61_p5, %p60_p3  ;;  %p90_p10 = scmp.eq.s32.totalorder %s529_s13, 1 }
   0xe   : > { %p796_p9 = por %p84_p6, %p54_p1  ;;  %p559_p13 = scmp.lt.s32.totalorder %s726_s11, 2 }
   0xf   : > { %s801_s20 = scalar_select %p45_p7, %s714_s8, %s47_s15  }
  0x10   : > { %s971_s19 = scalar_select %p796_p9, 1, 0 }
  0x11   : > { %p803_p11 = por %p90_p10, %p60_p3  ;;  %s110_s22 = sand.u32 1, %s714_s8  }
  0x12   : > { %s532_s23 = sshll.u32 %s110_s22, 6  ;;  %s542_s24 = sshll.u32 %s722_s10, 10 }
  0x13   : > { %s972_s21 = scalar_select %p803_p11, 1, 0 }
  0x14   : > { %s814_s27 = scalar_lea.hbm %s966_s0, %s542_s24  ;;  %s114_s28 = scalar_lea.vmem [#allocation4], %s532_s23 }
  0x15   : > { %s125_s29 = sshll.u32 %s114_s28, 4  ;;  %p820_p0 = pnand %p559_p13, %p786_p4  ;;  %s816_s29 = int_to_ptr.vmem [resolvable:$true] %s125_s29 }
  0x16   : > { %s825_s2 = scalar_lea.sflag [#allocation5], %s110_s22  ;;  %s614_s3 = scalar_lea.hbm %s814_s27, 1024 }
  0x17   : > { %p615_p2 = scmp.ne.s32.totalorder %s814_s27, %s614_s3  ;;  %p616_p3 = pneg %p820_p0 }
  0x18   : > { %s619_s12 = scalar_lea.hbm %s966_s0, 2048  ;;  %p620_p4 = scmp.lt.u32.totalorder %s814_s27, %s966_s0 }
  0x19   : > { %p617_p5 = pnand %p616_p3, %p615_p2  ;;  %p621_p7 = scmp.lt.u32.totalorder %s619_s12, %s614_s3 }
  0x1a   : > { %p623_p13 = scmp.lt.u32.totalorder %s614_s3, %s814_s27 }
  0x1b   : > { %p618_p6 = pneg %p617_p5  ;;  %p622_p10 = por %p621_p7, %p620_p4 }
  0x1d   : > { %p624_p12 = por %p623_p13, %p622_p10 }
  0x1f   : > { %p625_p1 = pnand %p624_p12, %p618_p6 }
  0x21   : > { %628 = shalt.err (!%p625_p1)
}
  0x22   : > { %s629_s16 = scalar_lea.vmem %s816_s29, 1024  ;;  %s728_s17 = smov [#allocation4]  }
  0x23   : > { %p630_p2 = scmp.ne.s32.totalorder %s816_s29, %s629_s16  ;;  %s634_s22 = sshll.u32 %s728_s17, 4  ;;  %s635_s22 = int_to_ptr.vmem [resolvable:$false] %s634_s22 }
  0x24   : > { %s636_s23 = scalar_lea.vmem %s635_s22, 2048  ;;  %p637_p9 = scmp.lt.s32.totalorder %s816_s29, %s635_s22 }
  0x25   : > { %p632_p5 = pnand %p630_p2, %p616_p3  ;;  %p638_p4 = scmp.lt.s32.totalorder %s636_s23, %s629_s16 }
  0x27   : > { %p633_p11 = pneg %p632_p5  ;;  %p639_p7 = por %p638_p4, %p637_p9 }
  0x29   : > { %p640_p10 = pnand %p639_p7, %p633_p11 }
  0x2b   : > { %643 = shalt.err (!%p640_p10)
}
  0x2c   : > { %s729_s24 = smov 128   ;;  %s730_s25 = smov 8  }
  0x2d   : > { %554 = dma.hbm_to_vmem [thread:$0]  (!%p820_p0), %s814_s27, 1024, %s816_s29, %s825_s2, %s729_s24, %s729_s24, %s730_s25  }
  0x2e   : > { %p133_p12 = scmp.lt.s32.totalorder %s726_s11, 3  ;;  %p974_p1 = scmp.ge.s32.totalorder %s726_s11, 1 }
  0x30   : > { %p134_p3 = pnand %p974_p1, %p133_p12 }
  0x31   : > { %s857_s26 = sand.u32 (!%p134_p3), 1, %s710_s7  }
  0x32   : > { %137 = sbr.rel (%p134_p3) target bundleno = 542 (0x21e), region = 24  ;;  %s537_s28 = sshll.u32 (!%p134_p3), %s857_s26, 6 }
  0x33   : > { %s140_s3 = scalar_lea.sflag (!%p134_p3), [#allocation5], %s857_s26  ;;  %s143_s4 = scalar_lea.vmem (!%p134_p3), [#allocation4], %s537_s28 }
  0x39   : > { %697 = dma.done.wait (%p792_p8), %s140_s3, 1024  }
  0x3a   : > { %699 = vsyncadd (%p792_p8), %s140_s3, 4294966272  ;;  %v174_v0 = vld [vmem:[%s143_s4] sm:$0xff]  ;;  %v176_v1 = vld [vmem:[%s143_s4 + $0x10] sm:$0xff]  ;;  %s731_s27 = smov 1   ;;  %vm190_vm0 = vcmask 1040384   ;;  %s732_s18 = smov 127  }
  0x3b   : > { %v175_v2 = vld [vmem:[%s143_s4 + $0x8] sm:$0xff]  ;;  %219 = vrot.lane.b32.xlu0 %v174_v0, %s731_s27  ;;  %223 = vrot.lane.b32.xlu1 %v176_v1, %s731_s27  ;;  %v177_v3 = vld [vmem:[%s143_s4 + $0x18] sm:$0xff]  ;;  %v191_v8 = vrot.slane %v174_v0, 7  ;;  %v194_v10 = vrot.slane %v176_v1, 7  ;;  %vm267_vm1 = vcmask 1046528   ;;  %vm288_vm2 = vcmask 130048  }
  0x3c   : > { %v179_v4 = vld [vmem:[%s143_s4 + $0x28] sm:$0xff]  ;;  %v865_v5 = vld [vmem:[%s143_s4 + $0x38] sm:$0xff]  ;;  %v178_v6 = vld [vmem:[%s143_s4 + $0x20] sm:$0xff]  ;;  %v192_v9 = vrot.slane %v175_v2, 7  ;;  %v195_v11 = vrot.slane %v177_v3, 7  ;;  %vm290_vm3 = vcmask 129024  }
  0x3d   : > { %v867_v7 = vld [vmem:[%s143_s4 + $0x30] sm:$0xff]  ;;  %v211_v17 = vsub.f32 %v174_v0, %v191_v8  ;;  %v213_v21 = vsub.f32 %v176_v1, %v194_v10  ;;  %v197_v22 = vrot.slane %v178_v6, 7  ;;  %v198_v23 = vrot.slane %v179_v4, 7  ;;  %s538_s2 = sshll.u32 %s718_s9, 4  ;;  %s160_s5 = scalar_lea.vmem [#allocation7], %s857_s26 }
  0x3e   : > { %v193_v12 = vsel %vm190_vm0, %v191_v8, %v192_v9  ;;  %v196_v20 = vsel %vm190_vm0, %v194_v10, %v195_v11  ;;  %v200_v54 = vrot.slane %v867_v7, 7  ;;  %v201_v56 = vrot.slane %v865_v5, 7  ;;  %s447_s12 = sshll.u32 %s160_s5, 4  ;;  %s916_s16 = scalar_lea.hbm %s967_s1, %s538_s2  ;;  %s918_s12 = int_to_ptr.vmem [resolvable:$true] %s447_s12 }
  0x3f   : > { %221 = vrot.lane.b32.xlu0 %v175_v2, %s731_s27  ;;  %225 = vrot.lane.b32.xlu1 %v177_v3, %s731_s27  ;;  %v212_v18 = vsub.f32 %v175_v2, %v193_v12  ;;  %v251_v29 = vmul.f32 %v211_v17, %v211_v17  ;;  %v214_v30 = vsub.f32 %v177_v3, %v196_v20  ;;  %vm354_vm4 = vcmask 121856   ;;  %s435_s17 = scalar_lea.sflag [#allocation6], %s857_s26  ;;  %s644_s22 = scalar_lea.vmem %s918_s12, 16 }
  0x40   : > { %v253_v33 = vmul.f32 %v213_v21, %v213_v21  ;;  %v199_v36 = vsel %vm190_vm0, %v197_v22, %v198_v23  ;;  %v215_v44 = vsub.f32 %v178_v6, %v197_v22  ;;  %v202_v63 = vsel %vm190_vm0, %v200_v54, %v201_v56  ;;  %p645_p8 = scmp.ne.s32.totalorder %s918_s12, %s644_s22  ;;  %p975_p9 = scmp.ne.s32.totalorder %s971_s19, 0 }
  0x41   : > { %v252_v31 = vmul.f32 %v212_v18, %v212_v18  ;;  %v268_v40 = vrot.slane %v251_v29, 1  ;;  %v254_v41 = vmul.f32 %v214_v30, %v214_v30  ;;  %v216_v47 = vsub.f32 %v179_v4, %v199_v36  ;;  %s734_s9 = smov [#allocation7]  }
  0x42   : > { %v271_v48 = vrot.slane %v253_v33, 1  ;;  %v255_v60 = vmul.f32 %v215_v44, %v215_v44  ;;  %vm172_vm5 = vcmask 8192   ;;  %p646_p11 = pnand %p645_p8, %p975_p9  ;;  %s648_s23 = sshll.u32 %s734_s9, 4  ;;  %s649_s23 = int_to_ptr.vmem [resolvable:$false] %s648_s23 }
  0x43   : > { %227 = vrot.lane.b32.xlu0 %v178_v6, %s731_s27  ;;  %229 = vrot.lane.b32.xlu1 %v179_v4, %s731_s27  ;;  %v269_v42 = vrot.slane %v252_v31, 1  ;;  %v272_v53 = vrot.slane %v254_v41, 1  ;;  %v256_v61 = vmul.f32 %v216_v47, %v216_v47  ;;  %s650_s24 = scalar_lea.vmem %s649_s23, 32  ;;  %p651_p6 = scmp.lt.s32.totalorder %s918_s12, %s649_s23 }
  0x44   : > { %p647_p0 = pneg %p646_p11  ;;  %p652_p13 = scmp.lt.s32.totalorder %s650_s24, %s644_s22 }
  0x45   : > { %v270_v52 = vsel %vm267_vm1, %v268_v40, %v269_v42  ;;  %v291_v59 = vsel %vm290_vm3, %v269_v42, 0.0  ;;  %v273_v62 = vsel %vm267_vm1, %v271_v48, %v272_v53  ;;  %v295_v9 = vsel %vm290_vm3, %v272_v53, 0.0 }
  0x46   : > { %v289_v58 = vsel %vm288_vm2, %v270_v52, 0.0  ;;  %p653_p2 = por %p652_p13, %p651_p6 }
  0x47   : > { %231 = vrot.lane.b32.xlu0 %v867_v7, %s731_s27  ;;  %233 = vrot.lane.b32.xlu1 %v865_v5, %s731_s27 }
  0x48   : > { %p654_p5 = pnand %p653_p2, %p647_p0 }
  0xad   : > { %v220_v13 = vpop.permute.xlu0 %219  ;;  %v224_v14 = vpop.permute.xlu1 %223 }
  0xae   : > { %v243_v15 = vsub.f32 %v174_v0, %v220_v13  ;;  %v245_v16 = vsub.f32 %v176_v1, %v224_v14  ;;  %v292_v0 = vadd.f32 %v291_v59, %v289_v58  ;;  %v293_v1 = vsel %vm288_vm2, %v273_v62, 0.0 }
  0xb0   : > { %v314_v19 = vmul.f32 %v243_v15, %v243_v15  ;;  %v316_v26 = vmul.f32 %v245_v16, %v245_v16  ;;  %v294_v8 = vadd.f32 %v293_v1, %v292_v0 }
  0xb1   : > { %v222_v24 = vpop.permute.xlu0 %221  ;;  %v226_v25 = vpop.permute.xlu1 %225 }
  0xb2   : > { %v244_v27 = vsub.f32 %v175_v2, %v222_v24  ;;  %330 = vrot.lane.b32.xlu0 %v314_v19, %s732_s18  ;;  %v246_v28 = vsub.f32 %v177_v3, %v226_v25  ;;  %v274_v2 = vrot.slane %v255_v60, 1  ;;  %v217_v3 = vsub.f32 %v867_v7, %v200_v54 }
  0xb3   : > { %v296_v13 = vadd.f32 %v295_v9, %v294_v8 }
  0xb4   : > { %v315_v32 = vmul.f32 %v244_v27, %v244_v27  ;;  %v317_v37 = vmul.f32 %v246_v28, %v246_v28  ;;  %v257_v10 = vmul.f32 %v217_v3, %v217_v3 }
  0xb5   : > { %v228_v34 = vpop.permute.xlu0 %227  ;;  %v230_v35 = vpop.permute.xlu1 %229 }
  0xb6   : > { %334 = vrot.lane.b32.xlu0 %v316_v26, %s732_s18  ;;  %332 = vrot.lane.b32.xlu1 %v315_v32, %s732_s18  ;;  %v247_v38 = vsub.f32 %v178_v6, %v228_v34  ;;  %v248_v39 = vsub.f32 %v179_v4, %v230_v35  ;;  %v218_v4 = vsub.f32 %v865_v5, %v202_v63  ;;  %v275_v6 = vrot.slane %v256_v61, 1 }
  0xb7   : > { %v277_v15 = vrot.slane %v257_v10, 1  ;;  %v164_v61 = vlaneseq }
  0xb8   : > { %v318_v43 = vmul.f32 %v247_v38, %v247_v38  ;;  %v319_v49 = vmul.f32 %v248_v39, %v248_v39  ;;  %v258_v11 = vmul.f32 %v218_v4, %v218_v4  ;;  %v276_v12 = vsel %vm267_vm1, %v274_v2, %v275_v6 }
  0xb9   : > { %v232_v45 = vpop.permute.xlu0 %231  ;;  %v234_v46 = vpop.permute.xlu1 %233  ;;  %v297_v14 = vsel %vm288_vm2, %v276_v12, 0.0  ;;  %v299_v18 = vsel %vm290_vm3, %v275_v6, 0.0  ;;  %v165_v62 = vand.u32 127, %v164_v61 }
  0xba   : > { %336 = vrot.lane.b32.xlu1 %v317_v37, %s732_s18  ;;  %v249_v50 = vsub.f32 %v867_v7, %v232_v45  ;;  %338 = vrot.lane.b32.xlu0 %v318_v43, %s732_s18  ;;  %v250_v51 = vsub.f32 %v865_v5, %v234_v46  ;;  %v278_v16 = vrot.slane %v258_v11, 1  ;;  %v298_v17 = vadd.f32 %v297_v14, %v296_v13 }
  0xbb   : > { %v733_v46 = vmov 0.0   ;;  %vm380_vm6 = vcmp.eq.s32.totalorder %v165_v62, 0 }
  0xbc   : > { %v320_v55 = vmul.f32 %v249_v50, %v249_v50  ;;  %v321_v57 = vmul.f32 %v250_v51, %v250_v51  ;;  %v279_v7 = vsel %vm267_vm1, %v277_v15, %v278_v16  ;;  %v300_v19 = vadd.f32 %v299_v18, %v298_v17  ;;  %173 = vst.msk [vmem:[#allocation2] sm:$0x1] %vm172_vm5, %v733_v46 }
  0xbd   : > { %v301_v5 = vsel %vm288_vm2, %v279_v7, 0.0  ;;  %v303_v21 = vsel %vm290_vm3, %v278_v16, 0.0 }
  0xbe   : > { %340 = vrot.lane.b32.xlu1 %v319_v49, %s732_s18  ;;  %342 = vrot.lane.b32.xlu0 %v320_v55, %s732_s18  ;;  %v302_v20 = vadd.f32 %v301_v5, %v300_v19 }
  0xc0   : > { %v304_v22 = vadd.f32 %v303_v21, %v302_v20 }
  0xc2   : > { %344 = vrot.lane.b32.xlu1 %v321_v57, %s732_s18 }
  0xc3   : > { %v379_v63 = vld [vmem:[#allocation2] sm:$0x1] }
  0xdd   : > { %305 = vadd.xlane.f32.xlu0 %v304_v22 }
 0x124   : > { %v331_v23 = vpop.permute.xlu0 %330 }
 0x125   : > { %v355_v26 = vsel %vm354_vm4, %v331_v23, 0.0 }
 0x128   : > { %v333_v24 = vpop.permute.xlu1 %332  ;;  %v335_v25 = vpop.permute.xlu0 %334 }
 0x129   : > { %v356_v27 = vsel %vm354_vm4, %v333_v24, 0.0  ;;  %v358_v29 = vsel %vm354_vm4, %v335_v25, 0.0 }
 0x12a   : > { %v357_v28 = vadd.f32 %v356_v27, %v355_v26 }
 0x12c   : > { %v359_v30 = vadd.f32 %v358_v29, %v357_v28  ;;  %v337_v31 = vpop.permute.xlu1 %336  ;;  %v339_v32 = vpop.permute.xlu0 %338 }
 0x12d   : > { %v360_v33 = vsel %vm354_vm4, %v337_v31, 0.0  ;;  %v362_v34 = vsel %vm354_vm4, %v339_v32, 0.0 }
 0x12e   : > { %v361_v35 = vadd.f32 %v360_v33, %v359_v30 }
 0x130   : > { %v363_v36 = vadd.f32 %v362_v34, %v361_v35  ;;  %v341_v37 = vpop.permute.xlu1 %340  ;;  %v343_v38 = vpop.permute.xlu0 %342 }
 0x131   : > { %v364_v39 = vsel %vm354_vm4, %v341_v37, 0.0  ;;  %v366_v40 = vsel %vm354_vm4, %v343_v38, 0.0 }
 0x132   : > { %v365_v41 = vadd.f32 %v364_v39, %v363_v36 }
 0x134   : > { %v367_v42 = vadd.f32 %v366_v40, %v365_v41  ;;  %v345_v43 = vpop.permute.xlu1 %344 }
 0x135   : > { %v368_v44 = vsel %vm354_vm4, %v345_v43, 0.0 }
 0x136   : > { %v369_v45 = vadd.f32 %v368_v44, %v367_v42 }
 0x138   : > { %370 = vadd.xlane.f32.xlu1 %v369_v45 }
 0x16a   : > { %v306_v47 = vpop.xlane.xlu0 %305 }
 0x16b   : > { %v307_v48 = vrot.slane %v306_v47, 4 }
 0x16d   : > { %v308_v49 = vadd.f32 %v307_v48, %v306_v47 }
 0x16f   : > { %v309_v50 = vrot.slane %v308_v49, 2 }
 0x171   : > { %v310_v51 = vadd.f32 %v309_v50, %v308_v49 }
 0x173   : > { %v311_v52 = vrot.slane %v310_v51, 1 }
 0x175   : > { %v312_v53 = vadd.f32 %v311_v52, %v310_v51 }
 0x177   : > { %543 = vpush %v312_v53 }
 0x1a8   : > { %s544_s29 = spop %543 }
 0x1a9   : > { %v381_v0 = vstv %s544_s29 }
 0x1c5   : > { %v371_v54 = vpop.xlane.xlu1 %370 }
 0x1c6   : > { %v372_v55 = vrot.slane %v371_v54, 4 }
 0x1c8   : > { %v373_v56 = vadd.f32 %v372_v55, %v371_v54 }
 0x1ca   : > { %v374_v57 = vrot.slane %v373_v56, 2 }
 0x1cc   : > { %v375_v58 = vadd.f32 %v374_v57, %v373_v56 }
 0x1ce   : > { %v376_v59 = vrot.slane %v375_v58, 1 }
 0x1d0   : > { %v377_v60 = vadd.f32 %v376_v59, %v375_v58 }
 0x1d2   : > { %545 = vpush %v377_v60 }
 0x203   : > { %s546_s30 = spop %545 }
 0x204   : > { %v382_v1 = vstv %s546_s30 }
 0x205   : > { %v383_v2 = vsel %vm380_vm6, %v381_v0, %v382_v1 }
 0x206   : > { %v384_v3 = vadd.f32 %v383_v2, %v379_v63 }
 0x208   : > { %386 = vst.msk [vmem:[#allocation2] sm:$0x1] %vm172_vm5, %v384_v3 }
 0x20f   : > { %v432_v4 = vld [vmem:[#allocation2] sm:$0x1] }
 0x210   : > { %433 = vst.msk [vmem:[%s160_s5] sm:$0x1] %vm172_vm5, %v432_v4 }
 0x211   : > { %657 = shalt.err (!%p654_p5)
}
 0x212   : > { %s658_s25 = scalar_lea.hbm %s916_s16, 16  ;;  %s662_s3 = scalar_lea.hbm %s967_s1, 32 }
 0x213   : > { %p659_p4 = scmp.ne.s32.totalorder %s916_s16, %s658_s25  ;;  %p663_p12 = scmp.lt.u32.totalorder %s916_s16, %s967_s1 }
 0x214   : > { %p664_p1 = scmp.lt.u32.totalorder %s662_s3, %s658_s25  ;;  %p666_p8 = scmp.lt.u32.totalorder %s658_s25, %s916_s16 }
 0x215   : > { %p660_p7 = pnand %p659_p4, %p975_p9 }
 0x216   : > { %p665_p3 = por %p664_p1, %p663_p12 }
 0x217   : > { %p661_p10 = pneg %p660_p7 }
 0x218   : > { %p667_p11 = por %p666_p8, %p665_p3 }
 0x21a   : > { %p668_p0 = pnand %p667_p11, %p661_p10 }
 0x21c   : > { %671 = shalt.err (!%p668_p0)
}
 0x21d   : > { %549 = dma.vmem_to_hbm [thread:$0]  (%p975_p9), %s918_s12, 16, %s916_s16, %s435_s17  }
 0x21e PF: > { %s459_s18 = sand.u32 1, %s706_s6   ;;  %p976_p6 = scmp.ne.s32.totalorder %s972_s21, 0 }
 0x21f   : > { %p977_p13 = scmp.ge.s32.totalorder %s726_s11, 2  ;;  %s460_s29 = scalar_lea.sflag [#allocation6], %s459_s18 }
 0x221   : > { %p556_p2 = pnand %p977_p13, %p976_p6 }
 0x223   : > { %701 = dma.done.wait (!%p556_p2), %s460_s29, 16  }
 0x224   : > { %703 = vsyncadd (!%p556_p2), %s460_s29, 4294967280  ;;  %s17_s11 = sadd.s32 1, %s726_s11   ;;  %s978_s6 = smov %s710_s7 }
 0x225   : > { %p14_p5 = scmp.ge.s32.totalorder %s17_s11, 4   ;;  %s979_s7 = smov %s714_s8 }
 0x226   : > { %s980_s8 = smov %s801_s20  ;;  %s981_s9 = smov %s722_s10 }
 0x227   : > { %s982_s10 = smov %s984_s14  ;;  %16 = sbr.rel (!%p14_p5) target bundleno = 6 (0x6), region = 81 }
 0x22e   :  { %464 = vsyncpa [#allocation5], 1 }
 0x22f   :  { %466 = vsyncpa [#allocation5 + $0x1], 1 }
 0x230   :  { %467 = vsyncpa [#allocation6], 1 }
 0x231   :  { %469 = vsyncpa [#allocation6 + $0x1], 1 }

</bundles_post_ra>
